<compile_context>
chip_gen: v7x
topology: tpu7x:2x2x1
jax: 0.10.0
libtpu: 0.0.40
codegen_flags: <defaults>
</compile_context>

<pallas_src>
import functools

import jax
import jax.numpy as jnp
from jax.experimental import pallas as pl
from jax.experimental.pallas import tpu as pltpu


# ------------------------------ fused SE kernel ------------------------------
def _se_kernel(x_ref, w1_ref, b1_ref, w2_ref, b2_ref, o_ref, *, inv_hw):
    # x_ref: (1, C, HW); w1: (mid, C); b1: (mid, 1); w2: (C, mid); b2: (C, 1)
    x = x_ref[0]                                               # (C, HW) f32
    # Squeeze: global average pool over the spatial (lane) axis.
    pooled = jnp.sum(x, axis=1, keepdims=True) * inv_hw        # (C, 1)
    # Excite: Linear -> LeakyReLU(0.05) -> Linear -> Sigmoid.
    h = jnp.dot(w1_ref[...], pooled,
                preferred_element_type=jnp.float32) + b1_ref[...]   # (mid, 1)
    h = jnp.where(h >= 0.0, h, 0.05 * h)                       # LeakyReLU(0.05)
    z = jnp.dot(w2_ref[...], h,
                preferred_element_type=jnp.float32) + b2_ref[...]   # (C, 1)
    s = 1.0 / (1.0 + jnp.exp(-z))                              # Sigmoid
    # Scale: broadcast the per-channel weight across the lane (spatial) dim.
    o_ref[0] = (x * s).astype(o_ref.dtype)


@jax.jit
def se_block(x_nchw, params):
    N, C, H, W = x_nchw.shape
    HW = H * W
    mid = params["w1"].shape[0]
    x = x_nchw.reshape(N, C, HW)        # NCHW is channel-major; reshape is free
    b1 = params["b1"].reshape(mid, 1)
    b2 = params["b2"].reshape(C, 1)
    kernel = functools.partial(_se_kernel, inv_hw=1.0 / HW)
    cost = pl.CostEstimate(
        flops=2 * N * (C * HW + 2 * mid * C),
        transcendentals=N * C,
        bytes_accessed=(2 * N * C * HW + 2 * mid * C + mid + C) * 4,
    )
    out = pl.pallas_call(
        kernel,
        out_shape=jax.ShapeDtypeStruct((N, C, HW), x.dtype),
        grid=(N,),
        in_specs=[
            pl.BlockSpec((1, C, HW), lambda n: (n, 0, 0)),
            pl.BlockSpec((mid, C), lambda n: (0, 0)),   # weights: constant
            pl.BlockSpec((mid, 1), lambda n: (0, 0)),   # index maps -> stay
            pl.BlockSpec((C, mid), lambda n: (0, 0)),   # VMEM-resident
            pl.BlockSpec((C, 1), lambda n: (0, 0)),
        ],
        out_specs=pl.BlockSpec((1, C, HW), lambda n: (n, 0, 0)),
        compiler_params=pltpu.CompilerParams(
            dimension_semantics=("parallel",)),
        cost_estimate=cost,
    )(x, params["w1"], b1, params["w2"], b2)
    return out.reshape(N, C, H, W)


# ------------------------ deterministic parameter init ----------------------
def init_params(key, f_in, mid_ch):
    k1, k2, k3, k4 = jax.random.split(key, 4)

    def u(k, shape, fan_in):
        bound = 1.0 / jnp.sqrt(jnp.float32(fan_in))
        return jax.random.uniform(k, shape, jnp.float32, -bound, bound)

    # PyTorch nn.Linear weight layout: (out_features, in_features)
    return {
        "w1": u(k1, (mid_ch, f_in), f_in),
        "b1": u(k2, (mid_ch,), f_in),
        "w2": u(k3, (f_in, mid_ch), mid_ch),
        "b2": u(k4, (f_in,), mid_ch),
    }


# ------------------------------ pure-JAX reference ---------------------------
def _ref_forward(x, p):
    pooled = jnp.mean(x, axis=(2, 3))                          # (N, C)
    h = pooled @ p["w1"].T + p["b1"]
    h = jnp.where(h >= 0.0, h, 0.05 * h)
    z = h @ p["w2"].T + p["b2"]
    s = jax.nn.sigmoid(z)
    return x * s[:, :, None, None]


if __name__ == "__main__":
    key = jax.random.PRNGKey(0)
    kx, kp = jax.random.split(key)

    N, C, H, W, MID = 2, 4, 16, 16, 8
    x = jax.random.normal(kx, (N, C, H, W), jnp.float32)
    params = init_params(kp, C, MID)

    out = se_block(x, params)
    out = jax.block_until_ready(out)

    ref = _ref_forward(x, params)
    assert out.shape == (N, C, H, W), out.shape
    err = float(jnp.max(jnp.abs(out - ref)))
    assert jnp.allclose(out, ref, atol=1e-4, rtol=1e-4), err

    print("KERNEL_OK")
</pallas_src>

<mosaic_0001>
module attributes {stable_mosaic.version = 11 : i64} {
  func.func @_se_kernel(%arg0: i32, %arg1: memref<1x4x256xf32, #tpu.memory_space<vmem>>, %arg2: memref<8x4xf32, #tpu.memory_space<vmem>>, %arg3: memref<8x1xf32, #tpu.memory_space<vmem>>, %arg4: memref<4x8xf32, #tpu.memory_space<vmem>>, %arg5: memref<4x1xf32, #tpu.memory_space<vmem>>, %arg6: memref<1x4x256xf32, #tpu.memory_space<vmem>>) attributes {dimension_semantics = [#tpu.dimension_semantics<parallel>], iteration_bounds = array<i64: 2>, scalar_prefetch = 0 : i64, scratch_operands = 0 : i64, tpu.core_type = #tpu.core_type<tc>, window_params = [{transform_indices = @transform_0, window_bounds = array<i64: 1, 4, 256>}, {pipeline_mode = #tpu.pipeline_mode<synchronous>, transform_indices = @transform_1, window_bounds = array<i64: 8, 4>}, {pipeline_mode = #tpu.pipeline_mode<synchronous>, transform_indices = @transform_2, window_bounds = array<i64: 8, 1>}, {pipeline_mode = #tpu.pipeline_mode<synchronous>, transform_indices = @transform_3, window_bounds = array<i64: 4, 8>}, {pipeline_mode = #tpu.pipeline_mode<synchronous>, transform_indices = @transform_4, window_bounds = array<i64: 4, 1>}, {transform_indices = @transform_5, window_bounds = array<i64: 1, 4, 256>}]} {
    %c0 = arith.constant 0 : index
    %c0_0 = arith.constant 0 : index
    %c0_1 = arith.constant 0 : index
    %0 = vector.load %arg1[%c0, %c0_0, %c0_1] : memref<1x4x256xf32, #tpu.memory_space<vmem>>, vector<1x4x256xf32>
    %1 = vector.shape_cast %0 : vector<1x4x256xf32> to vector<4x256xf32>
    %cst = arith.constant dense<0.000000e+00> : vector<4xf32>
    %2 = vector.multi_reduction <add>, %1, %cst [1] : vector<4x256xf32> to vector<4xf32>
    %3 = vector.shape_cast %2 : vector<4xf32> to vector<4x1xf32>
    %cst_2 = arith.constant 3.906250e-03 : f32
    %4 = vector.broadcast %cst_2 : f32 to vector<4x1xf32>
    %5 = arith.mulf %3, %4 : vector<4x1xf32>
    %c0_3 = arith.constant 0 : index
    %c0_4 = arith.constant 0 : index
    %6 = vector.load %arg2[%c0_3, %c0_4] : memref<8x4xf32, #tpu.memory_space<vmem>>, vector<8x4xf32>
    %cst_5 = arith.constant dense<0.000000e+00> : vector<8x1xf32>
    %7 = tpu.matmul %6, %5, %cst_5 {dimension_numbers = #tpu.dot_dimension_numbers<[1], [0], [0], [1], [0, 0, 1, 1], [], []>} : vector<8x4xf32>, vector<4x1xf32>, vector<8x1xf32> -> vector<8x1xf32>
    %c0_6 = arith.constant 0 : index
    %c0_7 = arith.constant 0 : index
    %8 = vector.load %arg3[%c0_6, %c0_7] : memref<8x1xf32, #tpu.memory_space<vmem>>, vector<8x1xf32>
    %9 = arith.addf %7, %8 : vector<8x1xf32>
    %cst_8 = arith.constant 0.000000e+00 : f32
    %10 = vector.broadcast %cst_8 : f32 to vector<8x1xf32>
    %11 = arith.cmpf oge, %9, %10 : vector<8x1xf32>
    %cst_9 = arith.constant 5.000000e-02 : f32
    %12 = vector.broadcast %cst_9 : f32 to vector<8x1xf32>
    %13 = arith.mulf %12, %9 : vector<8x1xf32>
    %14 = arith.select %11, %9, %13 : vector<8x1xi1>, vector<8x1xf32>
    %c0_10 = arith.constant 0 : index
    %c0_11 = arith.constant 0 : index
    %15 = vector.load %arg4[%c0_10, %c0_11] : memref<4x8xf32, #tpu.memory_space<vmem>>, vector<4x8xf32>
    %cst_12 = arith.constant dense<0.000000e+00> : vector<4x1xf32>
    %16 = tpu.matmul %15, %14, %cst_12 {dimension_numbers = #tpu.dot_dimension_numbers<[1], [0], [0], [1], [0, 0, 1, 1], [], []>} : vector<4x8xf32>, vector<8x1xf32>, vector<4x1xf32> -> vector<4x1xf32>
    %c0_13 = arith.constant 0 : index
    %c0_14 = arith.constant 0 : index
    %17 = vector.load %arg5[%c0_13, %c0_14] : memref<4x1xf32, #tpu.memory_space<vmem>>, vector<4x1xf32>
    %18 = arith.addf %16, %17 : vector<4x1xf32>
    %cst_15 = arith.constant 0.000000e+00 : f32
    %19 = vector.broadcast %cst_15 : f32 to vector<4x1xf32>
    %20 = arith.subf %19, %18 : vector<4x1xf32>
    %21 = math.exp %20 : vector<4x1xf32>
    %cst_16 = arith.constant 1.000000e+00 : f32
    %22 = vector.broadcast %cst_16 : f32 to vector<4x1xf32>
    %23 = arith.addf %22, %21 : vector<4x1xf32>
    %cst_17 = arith.constant 1.000000e+00 : f32
    %24 = vector.broadcast %cst_17 : f32 to vector<4x1xf32>
    %25 = arith.divf %24, %23 : vector<4x1xf32>
    %26 = vector.broadcast %25 : vector<4x1xf32> to vector<4x256xf32>
    %27 = arith.mulf %1, %26 : vector<4x256xf32>
    %c0_18 = arith.constant 0 : index
    %c0_19 = arith.constant 0 : index
    %c0_20 = arith.constant 0 : index
    %28 = vector.load %arg6[%c0_18, %c0_19, %c0_20] : memref<1x4x256xf32, #tpu.memory_space<vmem>>, vector<1x4x256xf32>
    %29 = vector.shape_cast %28 : vector<1x4x256xf32> to vector<4x256xf32>
    %30 = vector.shape_cast %27 : vector<4x256xf32> to vector<1x4x256xf32>
    tpu.vector_store %arg6[%c0_18, %c0_19, %c0_20], %30 {strides = array<i32>} : memref<1x4x256xf32, #tpu.memory_space<vmem>>, vector<1x4x256xf32>,
    return
  }
  func.func @transform_0(%arg0: i32) -> (i32, i32, i32) {
    %c0_i32 = arith.constant 0 : i32
    %c0_i32_0 = arith.constant 0 : i32
    %c0_i32_1 = arith.constant 0 : i32
    return %arg0, %c0_i32, %c0_i32_0 : i32, i32, i32
  }
  func.func @transform_1(%arg0: i32) -> (i32, i32) {
    %c0_i32 = arith.constant 0 : i32
    %c0_i32_0 = arith.constant 0 : i32
    %c0_i32_1 = arith.constant 0 : i32
    return %c0_i32, %c0_i32_0 : i32, i32
  }
  func.func @transform_2(%arg0: i32) -> (i32, i32) {
    %c0_i32 = arith.constant 0 : i32
    %c0_i32_0 = arith.constant 0 : i32
    %c0_i32_1 = arith.constant 0 : i32
    return %c0_i32, %c0_i32_0 : i32, i32
  }
  func.func @transform_3(%arg0: i32) -> (i32, i32) {
    %c0_i32 = arith.constant 0 : i32
    %c0_i32_0 = arith.constant 0 : i32
    %c0_i32_1 = arith.constant 0 : i32
    return %c0_i32, %c0_i32_0 : i32, i32
  }
  func.func @transform_4(%arg0: i32) -> (i32, i32) {
    %c0_i32 = arith.constant 0 : i32
    %c0_i32_0 = arith.constant 0 : i32
    %c0_i32_1 = arith.constant 0 : i32
    return %c0_i32, %c0_i32_0 : i32, i32
  }
  func.func @transform_5(%arg0: i32) -> (i32, i32, i32) {
    %c0_i32 = arith.constant 0 : i32
    %c0_i32_0 = arith.constant 0 : i32
    %c0_i32_1 = arith.constant 0 : i32
    return %arg0, %c0_i32, %c0_i32_0 : i32, i32, i32
  }
}

</mosaic_0001>

<bundles_post_ra>
// kernel: se_block.1
= control target key start
LH: loop header
LB: loop body
LE: loop exit
PB: predicated region body
PF: predicated region fallthrough
CT: control target
= control target key end

     0   :  { %s559_s18 = smov 0   ;;  %s598_s0 = inlined_call_operand.vmem [shape: f32[2,4,256], index: 0, kind: input, shape index: {}]   ;;  %s599_s1 = inlined_call_operand.vmem [shape: f32[8,4], index: 1, kind: input, shape index: {}]   ;;  %s600_s2 = inlined_call_operand.vmem [shape: f32[8,1], index: 2, kind: input, shape index: {}]   ;;  %s601_s3 = inlined_call_operand.vmem [shape: f32[4,8], index: 3, kind: input, shape index: {}]   ;;  %s602_s4 = inlined_call_operand.vmem [shape: f32[4,1], index: 4, kind: input, shape index: {}]   ;;  %s603_s5 = inlined_call_operand.vmem [shape: f32[2,4,256], index: 5, kind: output, shape index: {}]  }
   0x1 LB: > { %s469_s19 = sadd.s32 4294967295, %s523_s18   ;;  %p473_p0 = scmp.ge.s32.totalorder %s523_s18, 1  ;;  %s523_s18 = sphi %s559_s18, %s15_s18  }
   0x2   : > { %p187_p1 = scmp.lt.s32.totalorder %s523_s18, 3 }
   0x4   : > { %p188_p2 = pnand %p473_p0, %p187_p1 }
   0x5   : > { %p215_p3 = scmp.lt.s32.totalorder (!%p188_p2), %s469_s19, 1  ;;  %vm229_vm0 = vcmask (!%p188_p2), 1043456   ;;  %v525_v5 = vmov (!%p188_p2), 0.0   ;;  %vm526_vm1 = vmmov (!%p188_p2), 0   ;;  %v236_v8 = vld [vmem:[%s599_s1] sm:$0xff] (!%p188_p2)  ;;  %vm238_vm2 = vcmask (!%p188_p2), 31744  }
   0x6   : > { %191 = sbr.rel (%p188_p2) target bundleno = 760 (0x2f8), region = 40  ;;  %489 = vmatprep.subr.mxu0 (!%p188_p2), %v525_v5  ;;  %494 = vmatprep.subr.mxu1 (!%p188_p2), %v525_v5  ;;  %v237_v9 = vld [vmem:[%s600_s2] sm:$0xff] (!%p188_p2)  ;;  %vm320_vm4 = vcmask (!%p188_p2), 64512   ;;  %v527_v16 = vmov (!%p188_p2), 0   ;;  %v528_v26 = vmov (!%p188_p2), 839922192   ;;  %v407_v28 = vlaneseq (!%p188_p2) }
   0x7   : > { %491 = vmatprep.mubr.msk.f32.mxu0 (!%p188_p2), %vm526_vm1, %v525_v5  ;;  %496 = vmatprep.mubr.msk.f32.mxu1 (!%p188_p2), %vm526_vm1, %v525_v5  ;;  %v318_v14 = vld [vmem:[%s601_s3] sm:$0xf] (!%p188_p2)  ;;  %v405_v27 = vunpack.c.l.s4 (!%p188_p2), %v528_v26 }
   0x8   : > { %511 = vset.pattern.permute.xlu0 (!%p188_p2), %v527_v16  ;;  %v319_v17 = vld [vmem:[%s602_s4] sm:$0xf] (!%p188_p2)  ;;  %v408_v30 = vshrl.u32 (!%p188_p2), %v407_v28, 7 }
   0x9   : > { %v406_v29 = vunpack.c.0.s8 (!%p188_p2), %v405_v27 }
   0xb   : > { %v409_v31 = vsub.s32 (!%p188_p2), %v406_v29, %v408_v30 }
   0xd   : > { %s605_s19 = smov (!%p215_p3, %s469_s19), 1 }
   0xe   : > { %s483_s20 = sshll.u32 %s605_s19, 3 }
   0xf   : > { %s219_s23 = scalar_lea.vmem %s598_s0, %s483_s20  ;;  %s224_s9 = scalar_lea.vmem %s603_s5, %s483_s20 }
  0x10   : > { %v225_v0 = vld [vmem:[%s219_s23] sm:$0xff] }
  0x11   : > { %v227_v1 = vcombine.high %v225_v0, %v225_v0  ;;  %v230_v2 = vsel %vm229_vm0, %v225_v0, 0.0 }
  0x13   : > { %v231_v3 = vsel %vm229_vm0, %v227_v1, 0.0 }
  0x14   : > { %v232_v4 = vadd.f32 %v231_v3, %v230_v2 }
  0x16   : > { %233 = vadd.xlane.f32.xlu0 %v232_v4 }
  0xa3   : > { %v234_v6 = vpop.xlane.xlu0 %233 }
  0xa4   : > { %v235_v7 = vmul.f32 0.00390625, %v234_v6 }
  0xa6   : > { %490 = vmatpush3.msk.msra.mxu0 %vm229_vm0, %v235_v7 }
  0xa7   : > { %492 = vmatmul.mubr.msk.f32.vlgmr.msra.gmra.mrb[0].mxu0 %vm238_vm2, %v236_v8 }
 0x17a   : > { %v311_v10 = vpop.f32.mrb[0].mxu0 }
 0x17b   : > { %v312_v11 = vadd.f32 %v311_v10, %v237_v9  ;;  %v493_v12 = vpop.f32.mrb[1].mxu0 }
 0x17d   : > { %vm315_vm3 = vcmp.ge.f32.partialorder %v312_v11, 0.0  ;;  %v316_v13 = vmul.f32 0.05, %v312_v11 }
 0x17f   : > { %v317_v15 = vsel %vm315_vm3, %v312_v11, %v316_v13 }
 0x180   : > { %495 = vmatpush3.msra.mxu1 %v317_v15 }
 0x181   : > { %497 = vmatmul.mubr.msk.f32.vlgmr.msra.gmra.mrb[0].mxu1 %vm320_vm4, %v318_v14 }
 0x254   : > { %v390_v18 = vpop.f32.mrb[0].mxu1 }
 0x255   : > { %v391_v19 = vadd.f32 %v390_v18, %v319_v17  ;;  %v498_v20 = vpop.f32.mrb[1].mxu1 }
 0x257   : > { %v394_v21 = vsub.f32 0.0, %v391_v19 }
 0x259   : > { %v395_v22 = vmul.f32 1.442695, %v394_v21 }
 0x25b   : > { %513 = vpow2.f32 %v395_v22 }
 0x265   : > { %v514_v23 = vpop.eup %513 }
 0x266   : > { %v397_v24 = vadd.f32 1.0, %v514_v23 }
 0x268   : > { %515 = vrcp.f32 %v397_v24 }
 0x272   : > { %v516_v25 = vpop.eup %515 }
 0x273   : > { %402 = vperm.xlu0 %511, %v516_v25  }
 0x2f2   : > { %v403_v32 = vpop.permute.xlu0 %402 }
 0x2f3   : > { %v410_v33 = vrot.slane %v403_v32, %v409_v31 }
 0x2f5   : > { %v412_v34 = vmul.f32 %v410_v33, %v225_v0 }
 0x2f7   : > { %413 = vst [vmem:[%s224_s9] sm:$0xff] %v412_v34 }
 0x2f8 PF: > { %s15_s18 = sadd.s32 1, %s523_s18  }
 0x2f9   : > { %p12_p4 = scmp.ge.s32.totalorder %s15_s18, 4  }
 0x2fb   :  { %14 = sbr.rel (!%p12_p4) target bundleno = 1 (0x1), region = 70 }

</bundles_post_ra>
